<compile_context>
chip_gen: v6e
topology: v6e:2x2x1
jax: 0.10.0
libtpu: 0.0.40
codegen_flags: <defaults>
</compile_context>

<pallas_src>
import math

import jax
import jax.numpy as jnp
from jax import lax
from jax.experimental import pallas as pl
from jax.experimental.pallas import tpu as pltpu


# --------------------------------------------------------------------------- #
# Kernel
# --------------------------------------------------------------------------- #
def _fusion_kernel(t_ref, s_ref, w_ref, b_ref, o_ref):
    t = t_ref[...]                                   # (tile_r, lanes), lane-dense
    s = s_ref[...]

    mm_dtype = w_ref.dtype
    # Explicit, deliberate matmul precision:
    #  - bf16 operands + f32 accumulate (default): single MXU pass, v5e safe.
    #  - f32 operands + Precision.HIGHEST: exact nn.Linear semantics.
    prec = None if mm_dtype == jnp.bfloat16 else lax.Precision.HIGHEST
    lhs_t = t.astype(mm_dtype)
    lhs_s = s.astype(mm_dtype)

    # Linear(concat(t, s)) == t @ Wt + s @ Ws + b   (block-diag packed form)
    logits = (
        jnp.dot(lhs_t, w_ref[0], preferred_element_type=jnp.float32, precision=prec)
        + jnp.dot(lhs_s, w_ref[1], preferred_element_type=jnp.float32, precision=prec)
        + b_ref[...]
    )

    # sigmoid(x) == 0.5*tanh(0.5*x) + 0.5 : transcendental stays on the EUP
    # slot, no VALU divide from exp/(1+exp).
    z = 0.5 * jnp.tanh(0.5 * logits) + 0.5

    # s + z*(t - s)  ==  z*t + (1 - z)*s, one fewer VPU op per element.
    o_ref[...] = (s + z * (t - s)).astype(o_ref.dtype)


# --------------------------------------------------------------------------- #
# Wrapper helpers
# --------------------------------------------------------------------------- #
def _cdiv(a, b):
    return -(-a // b)


def _round_up(a, b):
    return _cdiv(a, b) * b


def _device_kind():
    try:
        return jax.devices()[0].device_kind.lower()
    except Exception:
        return ""


def _num_tensorcores():
    # v7x packs 2 TensorCores per chip; v5e/v6e have 1.
    return 2 if "v7" in _device_kind() else 1


def _packing(d):
    """Pick P rows packed per lane-row so lanes = P*D is a multiple of 128."""
    if d >= 128:
        # TODO(synk): D > 128 and not a multiple of 128 keeps a partially
        # masked trailing lane register; packing would blow up the kron size.
        return 1, d
    g = math.gcd(d, 128)
    p = 128 // g
    lanes = p * d
    if lanes > 512:
        # kron'd block-diag weights / MXU FLOP inflation not worth it.
        # TODO(synk): this fallback has sub-128-lane (masked) stores.
        return 1, d
    return p, lanes


def _choose_tile_rows(m_rows, target_rows, num_tc):
    """Sublane tile (multiple of 8, or the full extent for a single step)."""
    target_rows = max(8, (target_rows // 8) * 8)
    if m_rows <= target_rows:
        # Fits in one step.  Split only when there are multiple TensorCores to
        # feed AND the problem is large enough to amortise the ~0.35 us/step
        # overhead; on single-TC v5e/v6e one step is strictly cheaper.
        if num_tc > 1 and m_rows >= 1024:
            return _round_up(_cdiv(m_rows, num_tc), 8)
        return m_rows                       # single block == full array extent
    steps = _cdiv(m_rows, target_rows)
    if num_tc > 1 and steps % num_tc != 0:
        steps = _round_up(steps, num_tc)    # balanced work per TensorCore
    return max(8, _round_up(_cdiv(m_rows, steps), 8))


# --------------------------------------------------------------------------- #
# Public entry point
# --------------------------------------------------------------------------- #
def fusion_model(temporal, spatial, weight, bias, *, block_rows=2048,
                 matmul_dtype=jnp.bfloat16, out_dtype=None):
    """Gated fusion.

    temporal/spatial: (..., D); weight: (D, 2D) [PyTorch nn.Linear layout];
    bias: (D,).  matmul_dtype: jnp.bfloat16 (fast, default) or jnp.float32
    (exact nn.Linear semantics via Precision.HIGHEST).
    """
    assert temporal.shape == spatial.shape
    D = temporal.shape[-1]
    assert weight.shape == (D, 2 * D) and bias.shape == (D,)

    lead_shape = temporal.shape[:-1]
    M = math.prod(lead_shape) if lead_shape else 1
    if out_dtype is None:
        out_dtype = temporal.dtype

    P, lanes = _packing(D)

    # y = x @ W^T + b with x = [t, s]  ->  t @ W[:, :D].T + s @ W[:, D:].T + b
    w_t = weight[:, :D].T                            # (D, D)
    w_s = weight[:, D:].T                            # (D, D)
    if P > 1:
        eye = jnp.eye(P, dtype=weight.dtype)
        w_t = jnp.kron(eye, w_t)                     # (lanes, lanes) block-diag
        w_s = jnp.kron(eye, w_s)
        b_row = jnp.tile(bias, P).reshape(1, lanes)
    else:
        b_row = bias.reshape(1, lanes)
    w_stack = jnp.stack([w_t, w_s]).astype(matmul_dtype)   # one (2,lanes,lanes) operand
    b_row = b_row.astype(jnp.float32)                # added to f32 accumulator

    t2 = temporal.reshape(M, D)
    s2 = spatial.reshape(M, D)

    m_rows = _cdiv(M, P)                             # packed rows
    m_pack = m_rows * P
    if m_pack != M:
        # Tiny pad (< P rows) only so the packing reshape stays a free,
        # row-major view.  Ragged grid tails are handled by Pallas masking,
        # so no padding to a tile multiple is ever done.
        pad = m_pack - M
        t2 = jnp.pad(t2, ((0, pad), (0, 0)))
        s2 = jnp.pad(s2, ((0, pad), (0, 0)))
    t_p = t2.reshape(m_rows, lanes)                  # free row-major view
    s_p = s2.reshape(m_rows, lanes)

    # Scale tile rows so each input/output block stays ~1 MiB regardless of lanes.
    target_rows = max(8, (block_rows * 128 // lanes) // 8 * 8)
    tile_r = _choose_tile_rows(m_rows, target_rows, _num_tensorcores())
    grid_r = _cdiv(m_rows, tile_r)

    out = pl.pallas_call(
        _fusion_kernel,
        out_shape=jax.ShapeDtypeStruct((m_rows, lanes), out_dtype),
        grid_spec=pltpu.PrefetchScalarGridSpec(
            num_scalar_prefetch=0,
            grid=(grid_r,),
            in_specs=[
                pl.BlockSpec((tile_r, lanes), lambda i: (i, 0)),       # temporal
                pl.BlockSpec((tile_r, lanes), lambda i: (i, 0)),       # spatial
                # Constant block index -> fetched once, not re-DMA'd per step.
                pl.BlockSpec((2, lanes, lanes), lambda i: (0, 0, 0)),  # Wt/Ws
                pl.BlockSpec((1, lanes), lambda i: (0, 0)),            # bias
            ],
            out_specs=pl.BlockSpec((tile_r, lanes), lambda i: (i, 0)), # lane-dense
        ),
        compiler_params=pltpu.CompilerParams(
            dimension_semantics=("parallel",),
        ),
    )(t_p, s_p, w_stack, b_row)

    out = out.reshape(m_pack, D)
    if m_pack != M:                                  # only the tiny P-alignment pad
        out = out[:M]
    return out.reshape(*lead_shape, D)


# --------------------------------------------------------------------------- #
# References for the self-check
# --------------------------------------------------------------------------- #
def _reference_f32(temporal, spatial, weight, bias):
    """Exact f32 nn.Linear semantics."""
    x = jnp.concatenate([temporal, spatial], axis=-1)
    logits = jnp.dot(x, weight.T, precision=lax.Precision.HIGHEST) + bias
    z = jax.nn.sigmoid(logits)
    return z * temporal + (1.0 - z) * spatial


def _reference_bf16_gate(temporal, spatial, weight, bias):
    """Same numerics as the kernel's default bf16-gate path (f32 accumulate)."""
    D = temporal.shape[-1]
    t_b = temporal.astype(jnp.bfloat16)
    s_b = spatial.astype(jnp.bfloat16)
    w_b = weight.astype(jnp.bfloat16)
    logits = (
        jnp.dot(t_b, w_b[:, :D].T, preferred_element_type=jnp.float32)
        + jnp.dot(s_b, w_b[:, D:].T, preferred_element_type=jnp.float32)
        + bias
    )
    z = jax.nn.sigmoid(logits)
    return z * temporal + (1.0 - z) * spatial


if __name__ == "__main__":
    # Small STAEformer-like shapes: batch=2, seq=8, nodes=16, model_dim=32.
    B, T, N, D = 2, 8, 16, 32
    key = jax.random.PRNGKey(0)
    k_t, k_s, k_w, k_b = jax.random.split(key, 4)

    temporal = jax.random.normal(k_t, (B, T, N, D), dtype=jnp.float32)
    spatial = jax.random.normal(k_s, (B, T, N, D), dtype=jnp.float32)

    # Deterministic nn.Linear-style init: U(-1/sqrt(fan_in), 1/sqrt(fan_in)), fan_in = 2D.
    bound = 1.0 / jnp.sqrt(jnp.float32(2 * D))
    weight = jax.random.uniform(k_w, (D, 2 * D), jnp.float32, -bound, bound)
    bias = jax.random.uniform(k_b, (D,), jnp.float32, -bound, bound)

    out = fusion_model(temporal, spatial, weight, bias)
    out = jax.block_until_ready(out)
    assert out.shape == (B, T, N, D)

    # Loose check vs exact-f32 semantics (bound of the bf16 gate rounding).
    ref_f32 = _reference_f32(temporal, spatial, weight, bias)
    assert jnp.allclose(out, ref_f32, atol=2e-2, rtol=1e-2)

    # Tight check vs a reference using the same bf16-gate numerics.
    ref_bf16 = _reference_bf16_gate(temporal, spatial, weight, bias)
    assert jnp.allclose(out, ref_bf16, atol=5e-4, rtol=1e-4)

    print("KERNEL_OK")
</pallas_src>

<mosaic_0001>
module attributes {stable_mosaic.version = 11 : i64} {
  func.func @_fusion_kernel(%arg0: i32, %arg1: memref<64x128xf32, #tpu.memory_space<vmem>>, %arg2: memref<64x128xf32, #tpu.memory_space<vmem>>, %arg3: memref<2x128x128xbf16, #tpu.memory_space<vmem>>, %arg4: memref<1x128xf32, #tpu.memory_space<vmem>>, %arg5: memref<64x128xf32, #tpu.memory_space<vmem>>) attributes {dimension_semantics = [#tpu.dimension_semantics<parallel>], iteration_bounds = array<i64: 1>, scalar_prefetch = 0 : i64, scratch_operands = 0 : i64, tpu.core_type = #tpu.core_type<tc>, window_params = [{transform_indices = @transform_0, window_bounds = array<i64: 64, 128>}, {transform_indices = @transform_1, window_bounds = array<i64: 64, 128>}, {pipeline_mode = #tpu.pipeline_mode<synchronous>, transform_indices = @transform_2, window_bounds = array<i64: 2, 128, 128>}, {pipeline_mode = #tpu.pipeline_mode<synchronous>, transform_indices = @transform_3, window_bounds = array<i64: 1, 128>}, {transform_indices = @transform_4, window_bounds = array<i64: 64, 128>}]} {
    %c0 = arith.constant 0 : index
    %c0_0 = arith.constant 0 : index
    %0 = vector.load %arg1[%c0, %c0_0] : memref<64x128xf32, #tpu.memory_space<vmem>>, vector<64x128xf32>
    %c0_1 = arith.constant 0 : index
    %c0_2 = arith.constant 0 : index
    %1 = vector.load %arg2[%c0_1, %c0_2] : memref<64x128xf32, #tpu.memory_space<vmem>>, vector<64x128xf32>
    %2 = arith.truncf %0 : vector<64x128xf32> to vector<64x128xbf16>
    %3 = arith.truncf %1 : vector<64x128xf32> to vector<64x128xbf16>
    %c0_3 = arith.constant 0 : index
    %c0_4 = arith.constant 0 : index
    %c0_5 = arith.constant 0 : index
    %4 = vector.load %arg3[%c0_3, %c0_4, %c0_5] : memref<2x128x128xbf16, #tpu.memory_space<vmem>>, vector<1x128x128xbf16>
    %5 = vector.shape_cast %4 : vector<1x128x128xbf16> to vector<128x128xbf16>
    %cst = arith.constant dense<0.000000e+00> : vector<64x128xf32>
    %6 = tpu.matmul %2, %5, %cst {dimension_numbers = #tpu.dot_dimension_numbers<[1], [0], [0], [1], [0, 0, 1, 1], [], []>} : vector<64x128xbf16>, vector<128x128xbf16>, vector<64x128xf32> -> vector<64x128xf32>
    %c1 = arith.constant 1 : index
    %c0_6 = arith.constant 0 : index
    %c0_7 = arith.constant 0 : index
    %7 = vector.load %arg3[%c1, %c0_6, %c0_7] : memref<2x128x128xbf16, #tpu.memory_space<vmem>>, vector<1x128x128xbf16>
    %8 = vector.shape_cast %7 : vector<1x128x128xbf16> to vector<128x128xbf16>
    %cst_8 = arith.constant dense<0.000000e+00> : vector<64x128xf32>
    %9 = tpu.matmul %3, %8, %cst_8 {dimension_numbers = #tpu.dot_dimension_numbers<[1], [0], [0], [1], [0, 0, 1, 1], [], []>} : vector<64x128xbf16>, vector<128x128xbf16>, vector<64x128xf32> -> vector<64x128xf32>
    %10 = arith.addf %6, %9 : vector<64x128xf32>
    %c0_9 = arith.constant 0 : index
    %c0_10 = arith.constant 0 : index
    %11 = vector.load %arg4[%c0_9, %c0_10] : memref<1x128xf32, #tpu.memory_space<vmem>>, vector<1x128xf32>
    %12 = vector.broadcast %11 : vector<1x128xf32> to vector<64x128xf32>
    %13 = arith.addf %10, %12 : vector<64x128xf32>
    %cst_11 = arith.constant 5.000000e-01 : f32
    %14 = vector.broadcast %cst_11 : f32 to vector<64x128xf32>
    %15 = arith.mulf %14, %13 : vector<64x128xf32>
    %16 = math.tanh %15 : vector<64x128xf32>
    %cst_12 = arith.constant 5.000000e-01 : f32
    %17 = vector.broadcast %cst_12 : f32 to vector<64x128xf32>
    %18 = arith.mulf %17, %16 : vector<64x128xf32>
    %cst_13 = arith.constant 5.000000e-01 : f32
    %19 = vector.broadcast %cst_13 : f32 to vector<64x128xf32>
    %20 = arith.addf %18, %19 : vector<64x128xf32>
    %21 = arith.subf %0, %1 : vector<64x128xf32>
    %22 = arith.mulf %20, %21 : vector<64x128xf32>
    %23 = arith.addf %1, %22 : vector<64x128xf32>
    %c0_14 = arith.constant 0 : index
    %c0_15 = arith.constant 0 : index
    %24 = vector.load %arg5[%c0_14, %c0_15] : memref<64x128xf32, #tpu.memory_space<vmem>>, vector<64x128xf32>
    tpu.vector_store %arg5[%c0_14, %c0_15], %23 {strides = array<i32>} : memref<64x128xf32, #tpu.memory_space<vmem>>, vector<64x128xf32>,
    return
  }
  func.func @transform_0(%arg0: i32) -> (i32, i32) {
    %c0_i32 = arith.constant 0 : i32
    %c0_i32_0 = arith.constant 0 : i32
    return %arg0, %c0_i32 : i32, i32
  }
  func.func @transform_1(%arg0: i32) -> (i32, i32) {
    %c0_i32 = arith.constant 0 : i32
    %c0_i32_0 = arith.constant 0 : i32
    return %arg0, %c0_i32 : i32, i32
  }
  func.func @transform_2(%arg0: i32) -> (i32, i32, i32) {
    %c0_i32 = arith.constant 0 : i32
    %c0_i32_0 = arith.constant 0 : i32
    %c0_i32_1 = arith.constant 0 : i32
    %c0_i32_2 = arith.constant 0 : i32
    return %c0_i32, %c0_i32_0, %c0_i32_1 : i32, i32, i32
  }
  func.func @transform_3(%arg0: i32) -> (i32, i32) {
    %c0_i32 = arith.constant 0 : i32
    %c0_i32_0 = arith.constant 0 : i32
    %c0_i32_1 = arith.constant 0 : i32
    return %c0_i32, %c0_i32_0 : i32, i32
  }
  func.func @transform_4(%arg0: i32) -> (i32, i32) {
    %c0_i32 = arith.constant 0 : i32
    %c0_i32_0 = arith.constant 0 : i32
    return %arg0, %c0_i32 : i32, i32
  }
}

</mosaic_0001>

<bundles_post_ra>
// kernel: tpu_custom_call.1
= control target key start
LH: loop header
LB: loop body
LE: loop exit
PB: predicated region body
PF: predicated region fallthrough
CT: control target
= control target key end

     0   :  { %9 = vsyncpa [#allocation3], 0  ;;  %s784_s0 = inlined_call_operand.hbm [shape: f32[64,128], index: 0, kind: input, shape index: {}]   ;;  %s785_s1 = inlined_call_operand.hbm [shape: f32[64,128], index: 1, kind: input, shape index: {}]   ;;  %s786_s2 = inlined_call_operand.hbm [shape: bf16[2,128,128], index: 2, kind: input, shape index: {}]   ;;  %s787_s3 = inlined_call_operand.vmem [shape: f32[1,128], index: 3, kind: input, shape index: {}]   ;;  %s788_s4 = inlined_call_operand.hbm [shape: f32[64,128], index: 4, kind: output, shape index: {}]  }
   0x1   :  { %10 = vsyncpa [#allocation6], 0 }
   0x2   :  { %11 = vsyncpa [#allocation4], 0  ;;  %s655_s15 = smov [#allocation5]   ;;  %s656_s17 = smov [#allocation2]  }
   0x3   :  { %s29_s16 = sshll.u32 %s655_s15, 4  ;;  %s17_s18 = sshll.u32 %s656_s17, 4  ;;  %s30_s16 = int_to_ptr.vmem [resolvable:$true] %s29_s16  ;;  %s18_s18 = int_to_ptr.vmem [resolvable:$true] %s17_s18 }
   0x4   :  { %s577_s19 = scalar_lea.vmem %s30_s16, 1024  ;;  %p582_p1 = scmp.lt.s32.totalorder %s30_s16, %s30_s16 }
   0x5   :  { %p578_p0 = scmp.ne.s32.totalorder %s30_s16, %s577_s19  ;;  %p583_p2 = scmp.lt.s32.totalorder %s577_s19, %s577_s19 }
   0x7   :  { %p584_p3 = por %p583_p2, %p582_p1 }
   0x9   :  { %p585_p4 = pnand %p584_p3, %p578_p0 }
   0xb   :  { %588 = shalt.err (!%p585_p4)
}
   0xc   :  { %s657_s20 = smov 128   ;;  %s658_s21 = smov 8  }
   0xd   :  { %35 = dma.hbm_to_vmem [thread:$0]  %s785_s1, 1024, %s30_s16, [#allocation6], %s657_s20, %s657_s20, %s658_s21  }
   0xe   :  { %s597_s24 = scalar_lea.vmem %s18_s18, 1024  ;;  %p602_p6 = scmp.lt.s32.totalorder %s18_s18, %s18_s18 }
   0xf   :  { %p598_p5 = scmp.ne.s32.totalorder %s18_s18, %s597_s24  ;;  %p603_p7 = scmp.lt.s32.totalorder %s597_s24, %s597_s24 }
  0x11   :  { %p604_p8 = por %p603_p7, %p602_p6 }
  0x13   :  { %p605_p9 = pnand %p604_p8, %p598_p5 }
  0x15   :  { %608 = shalt.err (!%p605_p9)
}
  0x16   :  { %23 = dma.hbm_to_vmem [thread:$0]  %s784_s0, 1024, %s18_s18, [#allocation3], %s657_s20, %s657_s20, %s658_s21  }
  0x17   :  { %s659_s27 = smov [#allocation7]  }
  0x18   :  { %s41_s28 = sshll.u32 %s659_s27, 4  ;;  %s42_s28 = int_to_ptr.vmem [resolvable:$true] %s41_s28 }
  0x19   :  { %s617_s29 = scalar_lea.vmem %s42_s28, 2048  ;;  %p622_p11 = scmp.lt.s32.totalorder %s42_s28, %s42_s28 }
  0x1a   :  { %p618_p10 = scmp.ne.s32.totalorder %s42_s28, %s617_s29  ;;  %p623_p12 = scmp.lt.s32.totalorder %s617_s29, %s617_s29 }
  0x1c   :  { %p624_p13 = por %p623_p12, %p622_p11 }
  0x1e   :  { %p625_p0 = pnand %p624_p13, %p618_p10 }
  0x20   :  { %628 = shalt.err (!%p625_p0)
}
  0x21   :  { %s660_s1 = smov 64   ;;  %s661_s30 = smov 4  }
  0x22   :  { %47 = dma.hbm_to_vmem [thread:$0]  %s786_s2, 2048, %s42_s28, [#allocation6], %s660_s1, %s660_s1, %s661_s30  }
  0x23   :  { %649 = dma.done.wait [#allocation3], 1024  }
  0x24   :  { %650 = vsyncadd [#allocation3], 4294966272 }
  0x25   :  { %651 = dma.done.wait [#allocation6], 3072  }
  0x26   :  { %652 = vsyncadd [#allocation6], 4294964224  ;;  %v537_v0 = vld [vmem:[#allocation7 + $0x78] sm:$0xff]   ;;  %v539_v2 = vld [vmem:[#allocation7 + $0x70] sm:$0xff]  }
  0x27   :  { %v538_v1 = vld [vmem:[#allocation7 + $0x38] sm:$0xff]   ;;  %481 = vmatprep.subr.bf16.mxu0 %v537_v0  ;;  %v540_v3 = vld [vmem:[#allocation7 + $0x30] sm:$0xff]   ;;  %v541_v4 = vld [vmem:[#allocation7 + $0x68] sm:$0xff]  }
  0x28   :  { %505 = vmatprep.subr.bf16.mxu1 %v538_v1  ;;  %482 = vmatpush3.bf16.msra.mxu0 %v537_v0  ;;  %v542_v5 = vld [vmem:[#allocation7 + $0x28] sm:$0xff]   ;;  %v543_v6 = vld [vmem:[#allocation7 + $0x60] sm:$0xff]   ;;  %v545_v8 = vld [vmem:[#allocation7 + $0x58] sm:$0xff]  }
  0x29   :  { %506 = vmatpush3.bf16.msra.mxu1 %v538_v1  ;;  %483 = vmatprep.subr.bf16.mxu0 %v539_v2  ;;  %v544_v7 = vld [vmem:[#allocation7 + $0x20] sm:$0xff]   ;;  %v546_v9 = vld [vmem:[#allocation7 + $0x18] sm:$0xff]   ;;  %v547_v10 = vld [vmem:[#allocation7 + $0x50] sm:$0xff]  }
  0x2a   :  { %507 = vmatprep.subr.bf16.mxu1 %v540_v3  ;;  %v703_v11 = vld [vmem:[#allocation5] sm:$0xff]  ;;  %v705_v12 = vld [vmem:[#allocation5 + $0x8] sm:$0xff]  ;;  %v548_v14 = vld [vmem:[#allocation7 + $0x10] sm:$0xff]  }
  0x2b   :  { %v707_v13 = vld [vmem:[#allocation2] sm:$0xff]  ;;  %v80_v15 = vpack.c.bf16 %v705_v12, %v703_v11  ;;  %v711_v16 = vld [vmem:[#allocation2 + $0x8] sm:$0xff]  ;;  %v715_v22 = vld [vmem:[#allocation5 + $0x10] sm:$0xff] }
  0x2c   :  { %484 = vmatpush3.bf16.msra.mxu0 %v539_v2  ;;  %v76_v17 = vpack.c.bf16 %v711_v16, %v707_v13  ;;  %v549_v18 = vld [vmem:[#allocation7 + $0x48] sm:$0xff]   ;;  %v551_v20 = vld [vmem:[#allocation7 + $0x40] sm:$0xff]   ;;  %v717_v23 = vld [vmem:[#allocation5 + $0x18] sm:$0xff] }
  0x2d   :  { %508 = vmatpush3.bf16.msra.mxu1 %v540_v3  ;;  %485 = vmatprep.subr.bf16.mxu0 %v541_v4  ;;  %v550_v19 = vld [vmem:[#allocation7 + $0x8] sm:$0xff]   ;;  %v552_v21 = vld [vmem:[#allocation7] sm:$0xff]   ;;  %v719_v24 = vld [vmem:[#allocation2 + $0x10] sm:$0xff]  ;;  %v81_v30 = vpack.c.bf16 %v717_v23, %v715_v22 }
  0x2e   :  { %509 = vmatprep.subr.bf16.mxu1 %v542_v5  ;;  %497 = vmatprep.mubr.bf16.mxu0 %v80_v15  ;;  %v721_v25 = vld [vmem:[#allocation2 + $0x18] sm:$0xff]  ;;  %v723_v26 = vld [vmem:[#allocation5 + $0x20] sm:$0xff]  ;;  %v725_v27 = vld [vmem:[#allocation5 + $0x28] sm:$0xff] }
  0x2f   :  { %521 = vmatprep.mubr.bf16.mxu1 %v76_v17  ;;  %v727_v28 = vld [vmem:[#allocation2 + $0x20] sm:$0xff]  ;;  %v729_v29 = vld [vmem:[#allocation2 + $0x28] sm:$0xff]  ;;  %v77_v31 = vpack.c.bf16 %v721_v25, %v719_v24  ;;  %v82_v32 = vpack.c.bf16 %v725_v27, %v723_v26  ;;  %v739_v34 = vld [vmem:[#allocation5 + $0x30] sm:$0xff] }
  0x30   :  { %486 = vmatpush3.bf16.msra.mxu0 %v541_v4  ;;  %v78_v33 = vpack.c.bf16 %v729_v29, %v727_v28  ;;  %v741_v35 = vld [vmem:[#allocation5 + $0x38] sm:$0xff]  ;;  %v743_v36 = vld [vmem:[#allocation2 + $0x30] sm:$0xff]  ;;  %v456_v42 = vld [vmem:[%s787_s3] ss:$0 sm:$0xff]  ;;  %s662_s3 = smov [#allocation8]  }
  0x31   :  { %510 = vmatpush3.bf16.msra.mxu1 %v542_v5  ;;  %487 = vmatprep.subr.bf16.mxu0 %v543_v6  ;;  %v745_v37 = vld [vmem:[#allocation2 + $0x38] sm:$0xff]  ;;  %v83_v38 = vpack.c.bf16 %v741_v35, %v739_v34  ;;  %s427_s7 = sshll.u32 %s662_s3, 4  ;;  %s428_s7 = int_to_ptr.vmem [resolvable:$true] %s427_s7 }
  0x32   :  { %511 = vmatprep.subr.bf16.mxu1 %v544_v7  ;;  %v79_v39 = vpack.c.bf16 %v745_v37, %v743_v36  ;;  %s629_s8 = scalar_lea.vmem %s428_s7, 1024  ;;  %p634_p2 = scmp.lt.s32.totalorder %s428_s7, %s428_s7 }
  0x33   :  { %p630_p1 = scmp.ne.s32.totalorder %s428_s7, %s629_s8  ;;  %p635_p3 = scmp.lt.s32.totalorder %s629_s8, %s629_s8 }
  0x34   :  { %488 = vmatpush3.bf16.msra.mxu0 %v543_v6 }
  0x35   :  { %512 = vmatpush3.bf16.msra.mxu1 %v544_v7  ;;  %489 = vmatprep.subr.bf16.mxu0 %v545_v8  ;;  %p636_p4 = por %p635_p3, %p634_p2 }
  0x36   :  { %513 = vmatprep.subr.bf16.mxu1 %v546_v9 }
  0x37   :  { %p637_p5 = pnand %p636_p4, %p630_p1 }
  0x38   :  { %490 = vmatpush3.bf16.msra.mxu0 %v545_v8 }
  0x39   :  { %514 = vmatpush3.bf16.msra.mxu1 %v546_v9  ;;  %491 = vmatprep.subr.bf16.mxu0 %v547_v10 }
  0x3a   :  { %515 = vmatprep.subr.bf16.mxu1 %v548_v14 }
  0x3c   :  { %492 = vmatpush3.bf16.msra.mxu0 %v547_v10 }
  0x3d   :  { %516 = vmatpush3.bf16.msra.mxu1 %v548_v14  ;;  %493 = vmatprep.subr.bf16.mxu0 %v549_v18 }
  0x3e   :  { %517 = vmatprep.subr.bf16.mxu1 %v550_v19 }
  0x40   :  { %494 = vmatpush3.bf16.msra.mxu0 %v549_v18 }
  0x41   :  { %518 = vmatpush3.bf16.msra.mxu1 %v550_v19  ;;  %495 = vmatprep.subr.bf16.mxu0 %v551_v20 }
  0x42   :  { %519 = vmatprep.subr.bf16.mxu1 %v552_v21 }
  0x44   :  { %496 = vmatpush3.bf16.msra.mxu0 %v551_v20 }
  0x45   :  { %520 = vmatpush3.bf16.msra.mxu1 %v552_v21 }
  0x47   :  { %498 = vmatmul.mubr.bf16.vlgmr.msra.gmra.mxu0 %v81_v30  ;;  %v392_v30 = vsub.f32 %v719_v24, %v715_v22 }
  0x48   :  { %522 = vmatmul.mubr.bf16.vlgmr.msra.gmra.mxu1 %v77_v31  ;;  %501 = vmatprep.mubr.bf16.mxu0 %v82_v32 }
  0x49   :  { %525 = vmatprep.mubr.bf16.mxu1 %v78_v33  ;;  %v390_v33 = vsub.f32 %v707_v13, %v703_v11  ;;  %v396_v13 = vsub.f32 %v743_v36, %v739_v34  ;;  %v397_v36 = vsub.f32 %v745_v37, %v741_v35 }
  0x4f   :  { %502 = vmatmul.mubr.bf16.gmra.mxu0 %v83_v38 }
  0x50   :  { %526 = vmatmul.mubr.bf16.gmra.mxu1 %v79_v39 }
 0x107   :  { %v499_v40 = vpop.f32.mrf.mxu0 }
 0x108   :  { %v523_v41 = vpop.f32.mrf.mxu1 }
 0x109   :  { %v321_v43 = vadd.f32 %v523_v41, %v499_v40  ;;  %v199_v44 = vpop.f32.mrf.mxu0  ;;  %v393_v41 = vsub.f32 %v721_v25, %v717_v23 }
 0x10a   :  { %v312_v45 = vpop.f32.mrf.mxu1 }
 0x10b   :  { %v352_v46 = vadd.f32 %v456_v42, %v321_v43  ;;  %v313_v47 = vadd.f32 %v312_v45, %v199_v44  ;;  %v500_v48 = vpop.f32.mrf.mxu0 }
 0x10c   :  { %v524_v49 = vpop.f32.mrf.mxu1 }
 0x10d   :  { %v360_v50 = vmul.f32 0.5, %v352_v46  ;;  %v350_v51 = vadd.f32 %v456_v42, %v313_v47  ;;  %v324_v52 = vadd.f32 %v524_v49, %v500_v48  ;;  %v202_v53 = vpop.f32.mrf.mxu0  ;;  %v391_v46 = vsub.f32 %v711_v16, %v705_v12 }
 0x10e   :  { %v315_v54 = vpop.f32.mrf.mxu1 }
 0x10f   :  { %553 = vtanh.f32 %v360_v50  ;;  %v358_v55 = vmul.f32 0.5, %v350_v51  ;;  %v353_v56 = vadd.f32 %v456_v42, %v324_v52  ;;  %v316_v57 = vadd.f32 %v315_v54, %v202_v53  ;;  %v503_v58 = vpop.f32.mrf.mxu0 }
 0x110   :  { %v527_v59 = vpop.f32.mrf.mxu1 }
 0x111   :  { %555 = vtanh.f32 %v358_v55  ;;  %v361_v60 = vmul.f32 0.5, %v353_v56  ;;  %v351_v61 = vadd.f32 %v456_v42, %v316_v57  ;;  %v337_v62 = vadd.f32 %v527_v59, %v503_v58  ;;  %v215_v63 = vpop.f32.mrf.mxu0 }
 0x112   :  { %v328_v0 = vpop.f32.mrf.mxu1  ;;  %v394_v55 = vsub.f32 %v727_v28, %v723_v26  ;;  %v395_v28 = vsub.f32 %v729_v29, %v725_v27 }
 0x113   :  { %557 = vtanh.f32 %v361_v60  ;;  %v359_v1 = vmul.f32 0.5, %v351_v61  ;;  %v356_v2 = vadd.f32 %v456_v42, %v337_v62  ;;  %v329_v3 = vadd.f32 %v328_v0, %v215_v63  ;;  %v504_v4 = vpop.f32.mrf.mxu0 }
 0x114   :  { %v528_v5 = vpop.f32.mrf.mxu1 }
 0x115   :  { %559 = vtanh.f32 %v359_v1  ;;  %v364_v6 = vmul.f32 0.5, %v356_v2  ;;  %v354_v7 = vadd.f32 %v456_v42, %v329_v3  ;;  %v340_v8 = vadd.f32 %v528_v5, %v504_v4  ;;  %v218_v9 = vpop.f32.mrf.mxu0 }
 0x116   :  { %v331_v10 = vpop.f32.mrf.mxu1 }
 0x117   :  { %561 = vtanh.f32 %v364_v6  ;;  %v362_v14 = vmul.f32 0.5, %v354_v7  ;;  %v357_v15 = vadd.f32 %v456_v42, %v340_v8  ;;  %v332_v17 = vadd.f32 %v331_v10, %v218_v9 }
 0x119   :  { %563 = vtanh.f32 %v362_v14  ;;  %v365_v18 = vmul.f32 0.5, %v357_v15  ;;  %v355_v19 = vadd.f32 %v456_v42, %v332_v17 }
 0x11b   :  { %565 = vtanh.f32 %v365_v18  ;;  %v363_v20 = vmul.f32 0.5, %v355_v19 }
 0x11c   :  { %v554_v21 = vpop.eup %553 }
 0x11d   :  { %v376_v31 = vmul.f32 0.5, %v554_v21  ;;  %567 = vtanh.f32 %v363_v20 }
 0x11e   :  { %v556_v32 = vpop.eup %555 }
 0x11f   :  { %v384_v38 = vadd.f32 0.5, %v376_v31  ;;  %v374_v39 = vmul.f32 0.5, %v556_v32 }
 0x120   :  { %v558_v40 = vpop.eup %557 }
 0x121   :  { %v400_v43 = vmul.f32 %v392_v30, %v384_v38  ;;  %v382_v42 = vadd.f32 0.5, %v374_v39  ;;  %v377_v44 = vmul.f32 0.5, %v558_v40 }
 0x122   :  { %v560_v45 = vpop.eup %559 }
 0x123   :  { %v408_v24 = vadd.f32 %v400_v43, %v715_v22  ;;  %v398_v47 = vmul.f32 %v390_v33, %v382_v42  ;;  %v385_v48 = vadd.f32 0.5, %v377_v44  ;;  %v375_v49 = vmul.f32 0.5, %v560_v45 }
 0x124   :  { %v562_v50 = vpop.eup %561 }
 0x125   :  { %416 = vst [vmem:[#allocation8 + $0x10] sm:$0xff] %v408_v24  ;;  %v406_v51 = vadd.f32 %v398_v47, %v703_v11  ;;  %v401_v25 = vmul.f32 %v393_v41, %v385_v48  ;;  %v383_v52 = vadd.f32 0.5, %v375_v49  ;;  %v380_v53 = vmul.f32 0.5, %v562_v50 }
 0x126   :  { %v564_v54 = vpop.eup %563 }
 0x127   :  { %414 = vst [vmem:[#allocation8] sm:$0xff] %v406_v51  ;;  %v409_v16 = vadd.f32 %v401_v25, %v717_v23  ;;  %v399_v22 = vmul.f32 %v391_v46, %v383_v52  ;;  %v388_v56 = vadd.f32 0.5, %v380_v53  ;;  %v378_v57 = vmul.f32 0.5, %v564_v54 }
 0x128   :  { %v566_v58 = vpop.eup %565 }
 0x129   :  { %417 = vst [vmem:[#allocation8 + $0x18] sm:$0xff] %v409_v16  ;;  %v407_v11 = vadd.f32 %v399_v22, %v705_v12  ;;  %v404_v59 = vmul.f32 %v396_v13, %v388_v56  ;;  %v386_v60 = vadd.f32 0.5, %v378_v57  ;;  %v381_v61 = vmul.f32 0.5, %v566_v58 }
 0x12a   :  { %v568_v62 = vpop.eup %567 }
 0x12b   :  { %415 = vst [vmem:[#allocation8 + $0x8] sm:$0xff] %v407_v11  ;;  %v412_v23 = vadd.f32 %v404_v59, %v739_v34  ;;  %v402_v63 = vmul.f32 %v394_v55, %v386_v60  ;;  %v389_v0 = vadd.f32 0.5, %v381_v61  ;;  %v379_v1 = vmul.f32 0.5, %v568_v62 }
 0x12d   :  { %420 = vst [vmem:[#allocation8 + $0x30] sm:$0xff] %v412_v23  ;;  %v410_v2 = vadd.f32 %v402_v63, %v723_v26  ;;  %v405_v37 = vmul.f32 %v397_v36, %v389_v0  ;;  %v387_v3 = vadd.f32 0.5, %v379_v1 }
 0x12f   :  { %418 = vst [vmem:[#allocation8 + $0x20] sm:$0xff] %v410_v2  ;;  %v413_v12 = vadd.f32 %v405_v37, %v741_v35  ;;  %v403_v4 = vmul.f32 %v395_v28, %v387_v3 }
 0x131   :  { %421 = vst [vmem:[#allocation8 + $0x38] sm:$0xff] %v413_v12  ;;  %v411_v29 = vadd.f32 %v403_v4, %v725_v27 }
 0x133   :  { %419 = vst [vmem:[#allocation8 + $0x28] sm:$0xff] %v411_v29 }
 0x134   :  { %640 = shalt.err (!%p637_p5)
}
 0x135   :  { %433 = dma.vmem_to_hbm [thread:$0]  %s428_s7, 1024, %s788_s4, [#allocation4], %s657_s20, %s657_s20, %s658_s21  }
 0x136   :  { %653 = dma.done.wait [#allocation4], 1024  }
 0x137   :  { %654 = vsyncadd [#allocation4], 4294966272 }
 0x138   :  { %437 = vsyncpa [#allocation3], 1 }
 0x139   :  { %438 = vsyncpa [#allocation6], 1 }
 0x13a   :  { %439 = vsyncpa [#allocation4], 1 }

</bundles_post_ra>
